<compile_context>
chip_gen: v7x
topology: tpu7x:2x2x1
jax: 0.10.0
libtpu: 0.0.40
codegen_flags: <defaults>
</compile_context>

<pallas_src>
import jax
import jax.numpy as jnp
from jax.experimental import pallas as pl
from jax.experimental.pallas import tpu as pltpu


def _value_mlp_kernel(x_ref, w1_ref, b1_ref, w2_ref, b2_ref, w3t_ref, b3_ref, o_ref):
    # Layer 1: MXU matmul with f32 accumulation; bias + ReLU on the VPU in f32.
    h = jnp.dot(x_ref[...], w1_ref[...], preferred_element_type=jnp.float32)
    h = jnp.maximum(h + b1_ref[...], 0.0)
    # Layer 2: cast activations back to the weight dtype (no-op for f32) for the MXU.
    h = jnp.dot(h.astype(w2_ref.dtype), w2_ref[...],
                preferred_element_type=jnp.float32)
    h = jnp.maximum(h + b2_ref[...], 0.0)
    # Final 1-wide projection on the VPU/XLU (mul + lane reduction) instead of a padded
    # N=1 MXU matmul; feeds the lane-dense (1, tile_b) output row.
    row = jnp.sum(h * w3t_ref[...], axis=-1)[None, :] + b3_ref[...]   # (1, tile_b)
    o_ref[...] = row.astype(o_ref.dtype)


def _default_tile_b(B, D, itemsize):
    """Pick a batch tile that (a) satisfies the lane-dense output BlockSpec constraint
    (tile_b == B, or tile_b is a multiple of 128 that divides B), (b) keeps the
    double-buffered state tile within a ~4 MiB VMEM budget, and (c) gives at least
    2 grid steps for larger batches (pipelining + both TCs on v7x)."""
    if B % 128 != 0:
        return B                                     # single full-array tile
    cap = max(128, ((4 << 20) // max(D * itemsize, 1)) // 128 * 128)
    if B >= 256:
        cap = min(cap, max(128, (B // 2) // 128 * 128))   # prefer >= 2 grid steps
    t = min(B, cap)
    while t >= 128:
        if B % t == 0:
            return t
        t -= 128
    return B


def value_function_forward(state, params, *, tile_b=None, compute_dtype=None):
    """Pallas forward pass of ValueFunction.

    state: (B, state_dim) float32
    params: dict with w1 (D,H), b1 (1,H), w2 (H,H), b2 (1,H), w3 (H,1), b3 (1,1)
    compute_dtype: dtype for the state/weight matmul inputs (e.g. jnp.bfloat16 on
        v6e/v7x to halve the HBM-bound state read). Accumulation, biases, ReLU and
        the final projection stay in float32.
    returns: (B, 1) float32
    """
    B, D = state.shape
    H = params["w1"].shape[1]

    if compute_dtype is None:
        compute_dtype = state.dtype
    itemsize = jnp.dtype(compute_dtype).itemsize

    if tile_b is None:
        tile_b = _default_tile_b(B, D, itemsize)
    assert B % tile_b == 0, "tile_b must divide the batch"
    assert tile_b == B or tile_b % 128 == 0, \
        "tile_b must equal B or be a multiple of 128 (lane-dense output tiling)"
    num_tiles = B // tile_b

    x = state.astype(compute_dtype)
    w1 = params["w1"].astype(compute_dtype)
    w2 = params["w2"].astype(compute_dtype)
    b1 = params["b1"].astype(jnp.float32).reshape(1, H)
    b2 = params["b2"].astype(jnp.float32).reshape(1, H)
    w3t = params["w3"].astype(jnp.float32).reshape(1, H)   # (H, 1) -> (1, H)
    b3 = params["b3"].astype(jnp.float32).reshape(1, 1)

    # VMEM budget: double-buffered x/out tiles + (tiny, also double-buffered) weights.
    vmem_bytes = 2 * (
        tile_b * D * itemsize            # x tile
        + 8 * tile_b * 4                 # out tile (padded to 8 sublanes)
        + (D * H + H * H) * itemsize     # w1, w2
        + (3 * H + 1) * 4                # b1, b2, w3^T, b3
    ) + (2 << 20)                        # headroom for internal scratch
    vmem_limit = int(min(max(vmem_bytes, 16 << 20), 32 << 20))

    flops = 2 * B * (D * H + H * H + H)
    bytes_accessed = (B * D * itemsize + B * 4
                      + (D * H + H * H) * itemsize + (3 * H + 1) * 4)

    full = lambda shape: pl.BlockSpec(shape, lambda i: (0, 0))

    out_row = pl.pallas_call(
        _value_mlp_kernel,
        out_shape=jax.ShapeDtypeStruct((1, B), jnp.float32),
        grid_spec=pltpu.PrefetchScalarGridSpec(
            num_scalar_prefetch=0,
            grid=(num_tiles,),
            in_specs=[
                pl.BlockSpec((tile_b, D), lambda i: (i, 0)),   # state tile
                full((D, H)),   # w1
                full((1, H)),   # b1
                full((H, H)),   # w2
                full((1, H)),   # b2
                full((1, H)),   # w3^T
                full((1, 1)),   # b3
            ],
            # Lane-dense (1, tile_b) output row; wrapper reshapes (1, B) -> (B, 1).
            out_specs=pl.BlockSpec((1, tile_b), lambda i: (0, i)),
        ),
        compiler_params=pltpu.CompilerParams(
            dimension_semantics=("parallel",),
            vmem_limit_bytes=vmem_limit,
        ),
        cost_estimate=pl.CostEstimate(
            flops=flops, transcendentals=0, bytes_accessed=bytes_accessed),
    )(x, w1, b1, w2, b2, w3t, b3)

    return out_row.reshape(B, 1)


def init_params(key, state_dim, hidden_dim):
    """Deterministic synthetic init (shapes match ValueFunction.__init__)."""
    k1, k2, k3 = jax.random.split(key, 3)
    scale = 0.1
    return {
        "w1": scale * jax.random.normal(k1, (state_dim, hidden_dim), jnp.float32),
        "b1": jnp.zeros((1, hidden_dim), jnp.float32),
        "w2": scale * jax.random.normal(k2, (hidden_dim, hidden_dim), jnp.float32),
        "b2": jnp.zeros((1, hidden_dim), jnp.float32),
        "w3": scale * jax.random.normal(k3, (hidden_dim, 1), jnp.float32),
        "b3": jnp.zeros((1, 1), jnp.float32),
    }


def value_function_ref(state, p):
    """Pure-JAX reference (mirrors the PyTorch forward)."""
    h = jnp.maximum(state @ p["w1"] + p["b1"], 0.0)
    h = jnp.maximum(h @ p["w2"] + p["b2"], 0.0)
    return h @ p["w3"] + p["b3"]


if __name__ == "__main__":
    key = jax.random.PRNGKey(0)
    kx, kp, kx2 = jax.random.split(key, 3)

    batch, state_dim, hidden_dim = 256, 16, 32
    state = jax.random.normal(kx, (batch, state_dim), jnp.float32)
    params = init_params(kp, state_dim, hidden_dim)
    ref = value_function_ref(state, params)

    # f32 path: default tile picks 128 rows -> 2-step grid (pipelined, megacore-friendly).
    out = jax.block_until_ready(value_function_forward(state, params))
    assert out.shape == (batch, 1)
    assert jnp.allclose(out, ref, atol=2e-2, rtol=2e-2), "f32 mismatch vs reference"

    # bf16 compute path (halves the HBM-bound state read on v6e/v7x; f32 accumulation).
    out_bf16 = jax.block_until_ready(
        value_function_forward(state, params, compute_dtype=jnp.bfloat16))
    assert out_bf16.shape == (batch, 1)
    assert jnp.allclose(out_bf16, ref, atol=1e-1, rtol=1e-1), "bf16 mismatch vs reference"

    # Small / non-128-aligned batch: falls back to a single full-array tile.
    state_small = jax.random.normal(kx2, (40, state_dim), jnp.float32)
    ref_small = value_function_ref(state_small, params)
    out_small = jax.block_until_ready(value_function_forward(state_small, params))
    assert out_small.shape == (40, 1)
    assert jnp.allclose(out_small, ref_small, atol=2e-2, rtol=2e-2), "small-batch mismatch"

    print("KERNEL_OK")
</pallas_src>

<mosaic_0001>
module attributes {stable_mosaic.version = 11 : i64} {
  func.func @_value_mlp_kernel(%arg0: i32, %arg1: memref<128x16xf32, #tpu.memory_space<vmem>>, %arg2: memref<16x32xf32, #tpu.memory_space<vmem>>, %arg3: memref<1x32xf32, #tpu.memory_space<vmem>>, %arg4: memref<32x32xf32, #tpu.memory_space<vmem>>, %arg5: memref<1x32xf32, #tpu.memory_space<vmem>>, %arg6: memref<1x32xf32, #tpu.memory_space<vmem>>, %arg7: memref<1x1xf32, #tpu.memory_space<vmem>>, %arg8: memref<1x128xf32, #tpu.memory_space<vmem>>) attributes {dimension_semantics = [#tpu.dimension_semantics<parallel>], iteration_bounds = array<i64: 2>, scalar_prefetch = 0 : i64, scratch_operands = 0 : i64, tpu.core_type = #tpu.core_type<tc>, window_params = [{transform_indices = @transform_0, window_bounds = array<i64: 128, 16>}, {pipeline_mode = #tpu.pipeline_mode<synchronous>, transform_indices = @transform_1, window_bounds = array<i64: 16, 32>}, {pipeline_mode = #tpu.pipeline_mode<synchronous>, transform_indices = @transform_2, window_bounds = array<i64: 1, 32>}, {pipeline_mode = #tpu.pipeline_mode<synchronous>, transform_indices = @transform_3, window_bounds = array<i64: 32, 32>}, {pipeline_mode = #tpu.pipeline_mode<synchronous>, transform_indices = @transform_4, window_bounds = array<i64: 1, 32>}, {pipeline_mode = #tpu.pipeline_mode<synchronous>, transform_indices = @transform_5, window_bounds = array<i64: 1, 32>}, {pipeline_mode = #tpu.pipeline_mode<synchronous>, transform_indices = @transform_6, window_bounds = array<i64: 1, 1>}, {transform_indices = @transform_7, window_bounds = array<i64: 1, 128>}]} {
    %c0 = arith.constant 0 : index
    %c0_0 = arith.constant 0 : index
    %0 = vector.load %arg1[%c0, %c0_0] : memref<128x16xf32, #tpu.memory_space<vmem>>, vector<128x16xf32>
    %c0_1 = arith.constant 0 : index
    %c0_2 = arith.constant 0 : index
    %1 = vector.load %arg2[%c0_1, %c0_2] : memref<16x32xf32, #tpu.memory_space<vmem>>, vector<16x32xf32>
    %cst = arith.constant dense<0.000000e+00> : vector<128x32xf32>
    %2 = tpu.matmul %0, %1, %cst {dimension_numbers = #tpu.dot_dimension_numbers<[1], [0], [0], [1], [0, 0, 1, 1], [], []>} : vector<128x16xf32>, vector<16x32xf32>, vector<128x32xf32> -> vector<128x32xf32>
    %c0_3 = arith.constant 0 : index
    %c0_4 = arith.constant 0 : index
    %3 = vector.load %arg3[%c0_3, %c0_4] : memref<1x32xf32, #tpu.memory_space<vmem>>, vector<1x32xf32>
    %4 = vector.broadcast %3 : vector<1x32xf32> to vector<128x32xf32>
    %5 = arith.addf %2, %4 : vector<128x32xf32>
    %cst_5 = arith.constant 0.000000e+00 : f32
    %6 = vector.broadcast %cst_5 : f32 to vector<128x32xf32>
    %7 = arith.maximumf %5, %6 : vector<128x32xf32>
    %c0_6 = arith.constant 0 : index
    %c0_7 = arith.constant 0 : index
    %8 = vector.load %arg4[%c0_6, %c0_7] : memref<32x32xf32, #tpu.memory_space<vmem>>, vector<32x32xf32>
    %cst_8 = arith.constant dense<0.000000e+00> : vector<128x32xf32>
    %9 = tpu.matmul %7, %8, %cst_8 {dimension_numbers = #tpu.dot_dimension_numbers<[1], [0], [0], [1], [0, 0, 1, 1], [], []>} : vector<128x32xf32>, vector<32x32xf32>, vector<128x32xf32> -> vector<128x32xf32>
    %c0_9 = arith.constant 0 : index
    %c0_10 = arith.constant 0 : index
    %10 = vector.load %arg5[%c0_9, %c0_10] : memref<1x32xf32, #tpu.memory_space<vmem>>, vector<1x32xf32>
    %11 = vector.broadcast %10 : vector<1x32xf32> to vector<128x32xf32>
    %12 = arith.addf %9, %11 : vector<128x32xf32>
    %cst_11 = arith.constant 0.000000e+00 : f32
    %13 = vector.broadcast %cst_11 : f32 to vector<128x32xf32>
    %14 = arith.maximumf %12, %13 : vector<128x32xf32>
    %c0_12 = arith.constant 0 : index
    %c0_13 = arith.constant 0 : index
    %15 = vector.load %arg6[%c0_12, %c0_13] : memref<1x32xf32, #tpu.memory_space<vmem>>, vector<1x32xf32>
    %16 = vector.broadcast %15 : vector<1x32xf32> to vector<128x32xf32>
    %17 = arith.mulf %14, %16 : vector<128x32xf32>
    %cst_14 = arith.constant dense<0.000000e+00> : vector<128xf32>
    %18 = vector.multi_reduction <add>, %17, %cst_14 [1] : vector<128x32xf32> to vector<128xf32>
    %19 = vector.shape_cast %18 : vector<128xf32> to vector<1x128xf32>
    %c0_15 = arith.constant 0 : index
    %c0_16 = arith.constant 0 : index
    %20 = vector.load %arg7[%c0_15, %c0_16] : memref<1x1xf32, #tpu.memory_space<vmem>>, vector<1x1xf32>
    %21 = vector.broadcast %20 : vector<1x1xf32> to vector<1x128xf32>
    %22 = arith.addf %19, %21 : vector<1x128xf32>
    %c0_17 = arith.constant 0 : index
    %c0_18 = arith.constant 0 : index
    %23 = vector.load %arg8[%c0_17, %c0_18] : memref<1x128xf32, #tpu.memory_space<vmem>>, vector<1x128xf32>
    tpu.vector_store %arg8[%c0_17, %c0_18], %22 {strides = array<i32>} : memref<1x128xf32, #tpu.memory_space<vmem>>, vector<1x128xf32>,
    return
  }
  func.func @transform_0(%arg0: i32) -> (i32, i32) {
    %c0_i32 = arith.constant 0 : i32
    %c0_i32_0 = arith.constant 0 : i32
    return %arg0, %c0_i32 : i32, i32
  }
  func.func @transform_1(%arg0: i32) -> (i32, i32) {
    %c0_i32 = arith.constant 0 : i32
    %c0_i32_0 = arith.constant 0 : i32
    %c0_i32_1 = arith.constant 0 : i32
    return %c0_i32, %c0_i32_0 : i32, i32
  }
  func.func @transform_2(%arg0: i32) -> (i32, i32) {
    %c0_i32 = arith.constant 0 : i32
    %c0_i32_0 = arith.constant 0 : i32
    %c0_i32_1 = arith.constant 0 : i32
    return %c0_i32, %c0_i32_0 : i32, i32
  }
  func.func @transform_3(%arg0: i32) -> (i32, i32) {
    %c0_i32 = arith.constant 0 : i32
    %c0_i32_0 = arith.constant 0 : i32
    %c0_i32_1 = arith.constant 0 : i32
    return %c0_i32, %c0_i32_0 : i32, i32
  }
  func.func @transform_4(%arg0: i32) -> (i32, i32) {
    %c0_i32 = arith.constant 0 : i32
    %c0_i32_0 = arith.constant 0 : i32
    %c0_i32_1 = arith.constant 0 : i32
    return %c0_i32, %c0_i32_0 : i32, i32
  }
  func.func @transform_5(%arg0: i32) -> (i32, i32) {
    %c0_i32 = arith.constant 0 : i32
    %c0_i32_0 = arith.constant 0 : i32
    %c0_i32_1 = arith.constant 0 : i32
    return %c0_i32, %c0_i32_0 : i32, i32
  }
  func.func @transform_6(%arg0: i32) -> (i32, i32) {
    %c0_i32 = arith.constant 0 : i32
    %c0_i32_0 = arith.constant 0 : i32
    %c0_i32_1 = arith.constant 0 : i32
    return %c0_i32, %c0_i32_0 : i32, i32
  }
  func.func @transform_7(%arg0: i32) -> (i32, i32) {
    %c0_i32 = arith.constant 0 : i32
    %c0_i32_0 = arith.constant 0 : i32
    return %c0_i32, %arg0 : i32, i32
  }
}

</mosaic_0001>

<bundles_post_ra>
// kernel: tpu_custom_call.1
= control target key start
LH: loop header
LB: loop body
LE: loop exit
PB: predicated region body
PF: predicated region fallthrough
CT: control target
= control target key end

     0   :  { %s1624_s0 = inlined_call_operand.vmem [shape: f32[256,16], index: 0, kind: input, shape index: {}]   ;;  %s1625_s1 = inlined_call_operand.vmem [shape: f32[16,32], index: 1, kind: input, shape index: {}]   ;;  %s1626_s2 = inlined_call_operand.vmem [shape: f32[1,32], index: 2, kind: input, shape index: {}]   ;;  %s1627_s3 = inlined_call_operand.vmem [shape: f32[32,32], index: 3, kind: input, shape index: {}]   ;;  %s1628_s4 = inlined_call_operand.vmem [shape: f32[1,32], index: 4, kind: input, shape index: {}]   ;;  %s1629_s5 = inlined_call_operand.vmem [shape: f32[1,32], index: 5, kind: input, shape index: {}]   ;;  %s1630_s6 = inlined_call_operand.<no memory space> [shape: f32[1,1], index: 6, kind: input, shape index: {}]   ;;  %s1631_s7 = inlined_call_operand.hbm [shape: f32[1,256], index: 7, kind: output, shape index: {}]  }
   0x1   :  { %v12_v0 = vstv %s1630_s6 }
   0x2   :  { %13 = vst [vmem:[#allocation2] sm:$0x1] %v12_v0 }
   0x3   :  { %14 = vsyncpa [#allocation4], 0 }
   0x4   :  { %16 = vsyncpa [#allocation4 + $0x1], 0  ;;  %s1335_s26 = smov 0   ;;  %s1337_s27 = smov 0  }
   0x5   :  { %s1339_s28 = smov 0   ;;  %s1341_s29 = smov 0  }
   0x6 LB: > { %s1029_s6 = sadd.s32 4294967295, %s1288_s29   ;;  %s1030_s30 = sadd.s32 4294967294, %s1288_s29   ;;  %s1288_s29 = sphi %s1341_s29, %s1637_s29   ;;  %s1284_s28 = sphi %s1339_s28, %s1636_s28   ;;  %s1280_s27 = sphi %s1337_s27, %s1635_s27   ;;  %s1276_s26 = sphi %s1335_s26, %s1634_s26  }
   0x7   : > { %s1358_s8 = sadd.s32 1, %s1288_s29   ;;  %s181_s9 = sadd.s32 1, %s1284_s28 }
   0x8   : > { %s178_s10 = ssub.s32 %s1288_s29, %s1358_s8  ;;  %p191_p0 = scmp.ne.s32.totalorder %s1284_s28, %s1280_s27 }
   0x9   : > { %p179_p1 = scmp.eq.s32.totalorder %s178_s10, 0  ;;  %p192_p2 = scmp.eq.s32.totalorder %s1029_s6, 1 }
   0xa   : > { %p197_p3 = scmp.ne.s32.totalorder %s1280_s27, %s1276_s26  ;;  %p198_p4 = scmp.eq.s32.totalorder %s1030_s30, 1 }
   0xb   : > { %s1368_s11 = scalar_select %p179_p1, %s1284_s28, %s181_s9  }
   0xc   : > { %p1370_p5 = por %p192_p2, %p191_p0  ;;  %p1374_p6 = por %p198_p4, %p197_p3 }
   0xd   : > { %p1033_p7 = scmp.ge.s32.totalorder %s1288_s29, 1  ;;  %p243_p8 = scmp.lt.s32.totalorder %s1288_s29, 3 }
   0xf   : > { %p244_p9 = pnand %p1033_p7, %p243_p8 }
  0x10   : > { %v296_v1 = vld [vmem:[%s1625_s1] sm:$0xff] (!%p244_p9)  ;;  %v297_v2 = vld [vmem:[%s1625_s1 + $0x8] sm:$0xff] (!%p244_p9)  ;;  %s1386_s18 = sshll.u32 (!%p244_p9), %s1029_s6, 4  ;;  %vm305_vm0 = vcmask (!%p244_p9), 130048   ;;  %v517_v23 = vld [vmem:[%s1627_s3 + $0x10] sm:$0xff] (!%p244_p9)  ;;  %vm526_vm1 = vcmask (!%p244_p9), 261120  }
  0x11   : > { %247 = sbr.rel (%p244_p9) target bundleno = 697 (0x2b9), region = 48  ;;  %v515_v3 = vld [vmem:[%s1627_s3] sm:$0xff] (!%p244_p9)  ;;  %v1172_v4 = vpack.c.bf16 (!%p244_p9), %v297_v2, %v296_v1  ;;  %p275_p10 = scmp.lt.s32.totalorder (!%p244_p9), %s1386_s18, 31  ;;  %v516_v5 = vld [vmem:[%s1627_s3 + $0x8] sm:$0xff] (!%p244_p9)  ;;  %v518_v24 = vld [vmem:[%s1627_s3 + $0x18] sm:$0xff] (!%p244_p9)  ;;  %vm860_vm2 = vcmask (!%p244_p9), 130112  }
  0x12   : > { %v1176_v6 = vpack.c.bf16 (!%p244_p9), %v516_v5, %v515_v3  ;;  %v1180_v25 = vpack.c.bf16 (!%p244_p9), %v518_v24, %v517_v23  ;;  %v1036_v26 = vld [vmem:[%s1626_s2] ss:$0 sm:$0xff] (!%p244_p9)  ;;  %vm867_vm3 = vcmask (!%p244_p9), 195712   ;;  %vm874_vm4 = vcmask (!%p244_p9), 261312   ;;  %s1580_s9 = scalar_lea.hbm (!%p244_p9), %s1631_s7, %s1386_s18  ;;  %s1291_s15 = smov (!%p244_p9), [#allocation3]  }
  0x13   : > { %1173 = vmatprep.subr.bf16.mxu0 (!%p244_p9), %v1172_v4  ;;  %vm881_vm5 = vcmask (!%p244_p9), 326912   ;;  %vm888_vm6 = vcmask (!%p244_p9), 392512   ;;  %vm895_vm7 = vcmask (!%p244_p9), 458112   ;;  %vm902_vm8 = vcmask (!%p244_p9), 523712   ;;  %s1230_s16 = sshll.u32 (!%p244_p9), %s1291_s15, 4  ;;  %s1231_s16 = int_to_ptr.vmem [resolvable:$false] %s1230_s16 }
  0x14   : > { %1175 = vmatpush3.bf16.msra.mxu0 (!%p244_p9), %v1172_v4  ;;  %1177 = vmatprep.subr.bf16.mxu1 (!%p244_p9), %v1176_v6  ;;  %vm909_vm9 = vcmask (!%p244_p9), 589312   ;;  %vm916_vm10 = vcmask (!%p244_p9), 654912   ;;  %vm923_vm11 = vcmask (!%p244_p9), 720512   ;;  %vm930_vm12 = vcmask (!%p244_p9), 786112   ;;  %s1232_s17 = scalar_lea.vmem (!%p244_p9), %s1231_s16, 32 }
  0x15   : > { %1179 = vmatpush3.bf16.msra.mxu1 (!%p244_p9), %v1176_v6  ;;  %vm937_vm13 = vcmask (!%p244_p9), 851712   ;;  %vm944_vm14 = vcmask (!%p244_p9), 917312   ;;  %vm951_vm15 = vcmask (!%p244_p9), 982912  }
  0x16   : > { %1181 = vmatprep.subr.bf16.mxu1 (!%p244_p9), %v1180_v25 }
  0x18   : > { %s276_s23 = scalar_select %p275_p10, %s1386_s18, 31 }
  0x19   : > { %1183 = vmatpush3.bf16.msra.mxu1 %v1180_v25 }
  0x1a   : > { %s1035_s24 = sshll.u32 %s276_s23, 3  ;;  %s272_s23 = sand.u32 1, %s1280_s27  }
  0x1b   : > { %s1399_s30 = scalar_lea.vmem %s1624_s0, %s1035_s24  ;;  %s273_s24 = scalar_lea.vmem [#allocation3], %s272_s23 }
  0x1c   : > { %v280_v7 = vld [vmem:[%s1399_s30] sm:$0xff]  ;;  %v281_v8 = vld [vmem:[%s1399_s30 + $0x8] sm:$0xff]  ;;  %v282_v9 = vld [vmem:[%s1399_s30 + $0x10] sm:$0xff]  ;;  %s975_s25 = sshll.u32 %s273_s24, 4  ;;  %s963_s10 = scalar_lea.sflag [#allocation4], %s272_s23  ;;  %s1582_s25 = int_to_ptr.vmem [resolvable:$true] %s975_s25 }
  0x1d   : > { %1116 = vmatprep.mubr.msk.f32.mxu0 %vm305_vm0, %v280_v7  ;;  %v283_v10 = vld [vmem:[%s1399_s30 + $0x18] sm:$0xff]  ;;  %v284_v11 = vld [vmem:[%s1399_s30 + $0x20] sm:$0xff]  ;;  %v285_v12 = vld [vmem:[%s1399_s30 + $0x28] sm:$0xff]  ;;  %s1226_s14 = scalar_lea.vmem %s1582_s25, 16  ;;  %p1233_p0 = scmp.lt.s32.totalorder %s1582_s25, %s1231_s16 }
  0x1e   : > { %1117 = vmatmul.mubr.msk.f32.vlgmr.msra.gmra.mrb[0].mxu0 %vm305_vm0, %v281_v8  ;;  %v286_v13 = vld [vmem:[%s1399_s30 + $0x30] sm:$0xff]  ;;  %v287_v14 = vld [vmem:[%s1399_s30 + $0x38] sm:$0xff]  ;;  %v288_v15 = vld [vmem:[%s1399_s30 + $0x40] sm:$0xff]  ;;  %p1227_p11 = scmp.ne.s32.totalorder %s1582_s25, %s1226_s14  ;;  %p1234_p1 = scmp.lt.s32.totalorder %s1232_s17, %s1226_s14 }
  0x1f   : > { %1119 = vmatprep.mubr.msk.f32.mxu0 %vm305_vm0, %v282_v9  ;;  %v289_v16 = vld [vmem:[%s1399_s30 + $0x48] sm:$0xff]  ;;  %v290_v17 = vld [vmem:[%s1399_s30 + $0x50] sm:$0xff]  ;;  %v291_v18 = vld [vmem:[%s1399_s30 + $0x58] sm:$0xff] }
  0x20   : > { %v292_v19 = vld [vmem:[%s1399_s30 + $0x60] sm:$0xff]  ;;  %v293_v20 = vld [vmem:[%s1399_s30 + $0x68] sm:$0xff]  ;;  %v294_v21 = vld [vmem:[%s1399_s30 + $0x70] sm:$0xff]  ;;  %p1228_p12 = pnand %p1227_p11, %p1370_p5  ;;  %p1235_p2 = por %p1234_p1, %p1233_p0 }
  0x21   : > { %v295_v22 = vld [vmem:[%s1399_s30 + $0x78] sm:$0xff] }
  0x22   : > { %1120 = vmatmul.mubr.msk.f32.gmra.mrb[2].mxu0 %vm305_vm0, %v283_v10  ;;  %p1229_p13 = pneg %p1228_p12 }
  0x23   : > { %1122 = vmatprep.mubr.msk.f32.mxu0 %vm305_vm0, %v284_v11  ;;  %v1290_v11 = vmov 0  }
  0x24   : > { %1224 = vset.pattern.permute.xlu1 %v1290_v11  ;;  %1225 = vset.pattern.permute.xlu0 %v1290_v11  ;;  %p1236_p3 = pnand %p1235_p2, %p1229_p13 }
  0x26   : > { %1123 = vmatmul.mubr.msk.f32.gmra.mrb[4].mxu0 %vm305_vm0, %v285_v12  ;;  %v1461_v12 = vld [vmem:[%s1628_s4] ss:$0 sm:$0xff] }
  0x27   : > { %1125 = vmatprep.mubr.msk.f32.mxu0 %vm305_vm0, %v286_v13 }
  0x2a   : > { %1126 = vmatmul.mubr.msk.f32.gmra.mrb[6].mxu0 %vm305_vm0, %v287_v14 }
  0x2b   : > { %1128 = vmatprep.mubr.msk.f32.mxu0 %vm305_vm0, %v288_v15 }
  0x2e   : > { %1129 = vmatmul.mubr.msk.f32.gmra.mrb[8].mxu0 %vm305_vm0, %v289_v16 }
  0x2f   : > { %1131 = vmatprep.mubr.msk.f32.mxu0 %vm305_vm0, %v290_v17  ;;  %v1468_v17 = vld [vmem:[%s1629_s5] ss:$0 sm:$0xff] }
  0x32   : > { %1132 = vmatmul.mubr.msk.f32.gmra.mrb[10].mxu0 %vm305_vm0, %v291_v18 }
  0x33   : > { %1134 = vmatprep.mubr.msk.f32.mxu0 %vm305_vm0, %v292_v19 }
  0x36   : > { %1135 = vmatmul.mubr.msk.f32.gmra.mrb[12].mxu0 %vm305_vm0, %v293_v20 }
  0x37   : > { %1137 = vmatprep.mubr.msk.f32.mxu0 %vm305_vm0, %v294_v21 }
  0x3a   : > { %1138 = vmatmul.mubr.msk.f32.gmra.mrb[14].mxu0 %vm305_vm0, %v295_v22  ;;  %vm958_vm0 = vcmask 1048512  }
  0xf1   : > { %v1118_v27 = vpop.f32.mrb[0].mxu0 }
  0xf2   : > { %v426_v28 = vadd.f32 %v1118_v27, %v1036_v26  ;;  %v420_v29 = vpop.f32.mrb[1].mxu0 }
  0xf3   : > { %v421_v30 = vadd.f32 %v1036_v26, %v420_v29 }
  0xf4   : > { %v500_v33 = vmax.f32 %v426_v28, 0.0 }
  0xf5   : > { %v499_v31 = vmax.f32 %v421_v30, 0.0  ;;  %v1121_v32 = vpop.f32.mrb[2].mxu0 }
  0xf6   : > { %v436_v34 = vadd.f32 %v1121_v32, %v1036_v26  ;;  %v430_v35 = vpop.f32.mrb[3].mxu0 }
  0xf7   : > { %v431_v36 = vadd.f32 %v1036_v26, %v430_v35  ;;  %1148 = vmatprep.mubr.msk.f32.mxu1 %vm526_vm1, %v499_v31 }
  0xf8   : > { %1149 = vmatmul.mubr.msk.f32.vlgmr.msra.gmra.mrb[0].mxu1 %vm526_vm1, %v500_v33  ;;  %v502_v39 = vmax.f32 %v436_v34, 0.0 }
  0xf9   : > { %v501_v37 = vmax.f32 %v431_v36, 0.0  ;;  %v1124_v38 = vpop.f32.mrb[4].mxu0 }
  0xfa   : > { %v446_v40 = vadd.f32 %v1124_v38, %v1036_v26  ;;  %v440_v41 = vpop.f32.mrb[5].mxu0 }
  0xfb   : > { %v441_v42 = vadd.f32 %v1036_v26, %v440_v41  ;;  %1151 = vmatprep.mubr.msk.f32.mxu1 %vm526_vm1, %v501_v37 }
  0xfc   : > { %v504_v43 = vmax.f32 %v446_v40, 0.0  ;;  %1152 = vmatmul.mubr.msk.f32.gmra.mrb[2].mxu1 %vm526_vm1, %v502_v39 }
  0xfd   : > { %v503_v44 = vmax.f32 %v441_v42, 0.0  ;;  %v1127_v45 = vpop.f32.mrb[6].mxu0 }
  0xfe   : > { %v456_v46 = vadd.f32 %v1127_v45, %v1036_v26  ;;  %v450_v47 = vpop.f32.mrb[7].mxu0 }
  0xff   : > { %v451_v48 = vadd.f32 %v1036_v26, %v450_v47  ;;  %1154 = vmatprep.mubr.msk.f32.mxu1 %vm526_vm1, %v503_v44 }
 0x100   : > { %v506_v49 = vmax.f32 %v456_v46, 0.0  ;;  %1155 = vmatmul.mubr.msk.f32.gmra.mrb[4].mxu1 %vm526_vm1, %v504_v43 }
 0x101   : > { %v505_v50 = vmax.f32 %v451_v48, 0.0  ;;  %v1130_v51 = vpop.f32.mrb[8].mxu0 }
 0x102   : > { %v466_v52 = vadd.f32 %v1130_v51, %v1036_v26  ;;  %v460_v53 = vpop.f32.mrb[9].mxu0 }
 0x103   : > { %1157 = vmatprep.mubr.msk.f32.mxu1 %vm526_vm1, %v505_v50  ;;  %v461_v54 = vadd.f32 %v1036_v26, %v460_v53 }
 0x104   : > { %1158 = vmatmul.mubr.msk.f32.gmra.mrb[6].mxu1 %vm526_vm1, %v506_v49  ;;  %v508_v55 = vmax.f32 %v466_v52, 0.0 }
 0x105   : > { %v507_v56 = vmax.f32 %v461_v54, 0.0  ;;  %v1133_v57 = vpop.f32.mrb[10].mxu0 }
 0x106   : > { %v476_v58 = vadd.f32 %v1133_v57, %v1036_v26  ;;  %v470_v59 = vpop.f32.mrb[11].mxu0 }
 0x107   : > { %1160 = vmatprep.mubr.msk.f32.mxu1 %vm526_vm1, %v507_v56  ;;  %v471_v60 = vadd.f32 %v1036_v26, %v470_v59 }
 0x108   : > { %v510_v61 = vmax.f32 %v476_v58, 0.0  ;;  %1161 = vmatmul.mubr.msk.f32.gmra.mrb[8].mxu1 %vm526_vm1, %v508_v55 }
 0x109   : > { %v509_v62 = vmax.f32 %v471_v60, 0.0  ;;  %v1136_v63 = vpop.f32.mrb[12].mxu0 }
 0x10a   : > { %v486_v0 = vadd.f32 %v1136_v63, %v1036_v26  ;;  %v480_v1 = vpop.f32.mrb[13].mxu0 }
 0x10b   : > { %v481_v2 = vadd.f32 %v1036_v26, %v480_v1  ;;  %1163 = vmatprep.mubr.msk.f32.mxu1 %vm526_vm1, %v509_v62 }
 0x10c   : > { %v512_v3 = vmax.f32 %v486_v0, 0.0  ;;  %1164 = vmatmul.mubr.msk.f32.gmra.mrb[10].mxu1 %vm526_vm1, %v510_v61 }
 0x10d   : > { %v511_v4 = vmax.f32 %v481_v2, 0.0  ;;  %v1139_v5 = vpop.f32.mrb[14].mxu0 }
 0x10e   : > { %v496_v6 = vadd.f32 %v1139_v5, %v1036_v26  ;;  %v490_v7 = vpop.f32.mrb[15].mxu0 }
 0x10f   : > { %1166 = vmatprep.mubr.msk.f32.mxu1 %vm526_vm1, %v511_v4  ;;  %v491_v8 = vadd.f32 %v1036_v26, %v490_v7 }
 0x110   : > { %v514_v9 = vmax.f32 %v496_v6, 0.0  ;;  %1167 = vmatmul.mubr.msk.f32.gmra.mrb[12].mxu1 %vm526_vm1, %v512_v3 }
 0x111   : > { %v513_v10 = vmax.f32 %v491_v8, 0.0 }
 0x113   : > { %1169 = vmatprep.mubr.msk.f32.mxu1 %vm526_vm1, %v513_v10 }
 0x114   : > { %1170 = vmatmul.mubr.msk.f32.gmra.mrb[14].mxu1 %vm526_vm1, %v514_v9 }
 0x1cb   : > { %v1150_v13 = vpop.f32.mrb[0].mxu1 }
 0x1cc   : > { %v647_v14 = vadd.f32 %v1150_v13, %v1461_v12  ;;  %v641_v15 = vpop.f32.mrb[1].mxu1 }
 0x1cd   : > { %v642_v16 = vadd.f32 %v1461_v12, %v641_v15 }
 0x1ce   : > { %v721_v18 = vmax.f32 %v647_v14, 0.0 }
 0x1cf   : > { %v720_v19 = vmax.f32 %v642_v16, 0.0  ;;  %v1153_v20 = vpop.f32.mrb[2].mxu1 }
 0x1d0   : > { %v657_v21 = vadd.f32 %v1153_v20, %v1461_v12  ;;  %v651_v22 = vpop.f32.mrb[3].mxu1  ;;  %v744_v23 = vmul.f32 %v1468_v17, %v721_v18  ;;  %v807_v18 = vld [vmem:[#allocation2] sm:$0x1] }
 0x1d1   : > { %v652_v24 = vadd.f32 %v1461_v12, %v651_v22  ;;  %v743_v27 = vmul.f32 %v1468_v17, %v720_v19 }
 0x1d2   : > { %v723_v25 = vmax.f32 %v657_v21, 0.0  ;;  %v762_v26 = vsel %vm526_vm1, %v744_v23, 0.0 }
 0x1d3   : > { %v722_v28 = vmax.f32 %v652_v24, 0.0  ;;  %763 = vadd.xlane.f32.xlu0 %v762_v26  ;;  %v1156_v29 = vpop.f32.mrb[4].mxu1  ;;  %v759_v36 = vsel %vm526_vm1, %v743_v27, 0.0 }
 0x1d4   : > { %v667_v30 = vadd.f32 %v1156_v29, %v1461_v12  ;;  %v661_v31 = vpop.f32.mrb[5].mxu1  ;;  %v746_v32 = vmul.f32 %v1468_v17, %v723_v25 }
 0x1d5   : > { %v662_v33 = vadd.f32 %v1461_v12, %v661_v31  ;;  %v745_v37 = vmul.f32 %v1468_v17, %v722_v28 }
 0x1d6   : > { %v725_v34 = vmax.f32 %v667_v30, 0.0  ;;  %v768_v35 = vsel %vm526_vm1, %v746_v32, 0.0 }
 0x1d7   : > { %v724_v38 = vmax.f32 %v662_v33, 0.0  ;;  %769 = vadd.xlane.f32.xlu1 %v768_v35  ;;  %760 = vadd.xlane.f32.xlu0 %v759_v36  ;;  %v1159_v39 = vpop.f32.mrb[6].mxu1  ;;  %v765_v45 = vsel %vm526_vm1, %v745_v37, 0.0 }
 0x1d8   : > { %v677_v40 = vadd.f32 %v1159_v39, %v1461_v12  ;;  %v671_v41 = vpop.f32.mrb[7].mxu1  ;;  %v748_v46 = vmul.f32 %v1468_v17, %v725_v34 }
 0x1d9   : > { %v672_v42 = vadd.f32 %v1461_v12, %v671_v41  ;;  %v747_v43 = vmul.f32 %v1468_v17, %v724_v38  ;;  %v813_v38 = vlaneseq }
 0x1da   : > { %v727_v44 = vmax.f32 %v677_v40, 0.0  ;;  %v774_v55 = vsel %vm526_vm1, %v748_v46, 0.0 }
 0x1db   : > { %766 = vadd.xlane.f32.xlu1 %v765_v45  ;;  %v726_v47 = vmax.f32 %v672_v42, 0.0  ;;  %v771_v48 = vsel %vm526_vm1, %v747_v43, 0.0  ;;  %v1162_v49 = vpop.f32.mrb[8].mxu1  ;;  %v1516_v41 = vshrl.u32 %v813_v38, 7  ;;  %v1519_v42 = vand.u32 127, %v813_v38 }
 0x1dc   : > { %772 = vadd.xlane.f32.xlu0 %v771_v48  ;;  %v687_v50 = vadd.f32 %v1162_v49, %v1461_v12  ;;  %v750_v51 = vmul.f32 %v1468_v17, %v727_v44  ;;  %v681_v52 = vpop.f32.mrb[9].mxu1 }
 0x1dd   : > { %v682_v53 = vadd.f32 %v1461_v12, %v681_v52  ;;  %v749_v54 = vmul.f32 %v1468_v17, %v726_v47  ;;  %v855_v46 = vadd.s32 4294967288, %v1519_v42  ;;  %v862_v47 = vadd.s32 4294967280, %v1519_v42 }
 0x1de   : > { %v729_v56 = vmax.f32 %v687_v50, 0.0  ;;  %v780_v57 = vsel %vm526_vm1, %v750_v51, 0.0  ;;  %v853_v51 = vsub.s32 %v1519_v42, %v1516_v41  ;;  %v939_v38 = vadd.s32 4294967192, %v1519_v42 }
 0x1df   : > { %775 = vadd.xlane.f32.xlu1 %v774_v55  ;;  %v1165_v58 = vpop.f32.mrb[10].mxu1  ;;  %v728_v61 = vmax.f32 %v682_v53, 0.0  ;;  %v777_v62 = vsel %vm526_vm1, %v749_v54, 0.0  ;;  %v858_v52 = vsub.s32 %v855_v46, %v1516_v41  ;;  %v865_v54 = vsub.s32 %v862_v47, %v1516_v41 }
 0x1e0   : > { %781 = vadd.xlane.f32.xlu0 %v780_v57  ;;  %v697_v59 = vadd.f32 %v1165_v58, %v1461_v12  ;;  %v691_v60 = vpop.f32.mrb[11].mxu1  ;;  %v752_v0 = vmul.f32 %v1468_v17, %v729_v56  ;;  %v869_v57 = vadd.s32 4294967272, %v1519_v42 }
 0x1e1   : > { %v692_v63 = vadd.f32 %v1461_v12, %v691_v60  ;;  %v751_v8 = vmul.f32 %v1468_v17, %v728_v61  ;;  %v876_v60 = vadd.s32 4294967264, %v1519_v42 }
 0x1e2   : > { %v731_v1 = vmax.f32 %v697_v59, 0.0  ;;  %v786_v6 = vsel %vm526_vm1, %v752_v0, 0.0  ;;  %v883_v0 = vadd.s32 4294967256, %v1519_v42 }
 0x1e3   : > { %v1168_v2 = vpop.f32.mrb[12].mxu1  ;;  %v730_v5 = vmax.f32 %v692_v63, 0.0  ;;  %v783_v13 = vsel %vm526_vm1, %v751_v8, 0.0  ;;  %v872_v63 = vsub.s32 %v869_v57, %v1516_v41 }
 0x1e4   : > { %778 = vadd.xlane.f32.xlu0 %v777_v62  ;;  %v701_v3 = vpop.f32.mrb[13].mxu1  ;;  %v754_v4 = vmul.f32 %v1468_v17, %v731_v1  ;;  %v707_v7 = vadd.f32 %v1168_v2, %v1461_v12 }
 0x1e5   : > { %v702_v14 = vadd.f32 %v1461_v12, %v701_v3  ;;  %v753_v15 = vmul.f32 %v1468_v17, %v730_v5  ;;  %v879_v3 = vsub.s32 %v876_v60, %v1516_v41 }
 0x1e6   : > { %v733_v11 = vmax.f32 %v707_v7, 0.0 }
 0x1e7   : > { %v1171_v9 = vpop.f32.mrb[14].mxu1  ;;  %v732_v16 = vmax.f32 %v702_v14, 0.0  ;;  %v789_v19 = vsel %vm526_vm1, %v753_v15, 0.0 }
 0x1e8   : > { %787 = vadd.xlane.f32.xlu0 %v786_v6  ;;  %v711_v10 = vpop.f32.mrb[15].mxu1  ;;  %v756_v21 = vmul.f32 %v1468_v17, %v733_v11  ;;  %v717_v22 = vadd.f32 %v1171_v9, %v1461_v12  ;;  %v890_v6 = vadd.s32 4294967248, %v1519_v42  ;;  %v886_v9 = vsub.s32 %v883_v0, %v1516_v41 }
 0x1e9   : > { %v712_v20 = vadd.f32 %v1461_v12, %v711_v10  ;;  %v755_v25 = vmul.f32 %v1468_v17, %v732_v16  ;;  %v792_v12 = vsel %vm526_vm1, %v754_v4, 0.0  ;;  %v904_v16 = vadd.s32 4294967232, %v1519_v42 }
 0x1ea   : > { %v798_v24 = vsel %vm526_vm1, %v756_v21, 0.0  ;;  %v735_v26 = vmax.f32 %v717_v22, 0.0  ;;  %v893_v11 = vsub.s32 %v890_v6, %v1516_v41 }
 0x1eb   : > { %v734_v23 = vmax.f32 %v712_v20, 0.0  ;;  %v795_v27 = vsel %vm526_vm1, %v755_v25, 0.0  ;;  %v911_v20 = vadd.s32 4294967224, %v1519_v42  ;;  %v907_v25 = vsub.s32 %v904_v16, %v1516_v41 }
 0x1ec   : > { %784 = vadd.xlane.f32.xlu0 %v783_v13  ;;  %v758_v30 = vmul.f32 %v1468_v17, %v735_v26  ;;  %v897_v13 = vadd.s32 4294967240, %v1519_v42 }
 0x1ed   : > { %v757_v28 = vmul.f32 %v1468_v17, %v734_v23  ;;  %v815_v17 = vsub.s32 0, %v1516_v41 }
 0x1ee   : > { %v804_v31 = vsel %vm526_vm1, %v758_v30, 0.0  ;;  %v900_v23 = vsub.s32 %v897_v13, %v1516_v41  ;;  %v914_v30 = vsub.s32 %v911_v20, %v1516_v41 }
 0x1ef   : > { %v801_v29 = vsel %vm526_vm1, %v757_v28, 0.0 }
 0x1f0   : > { %810 = vperm.xlu1 %1224, %v807_v18   ;;  %790 = vadd.xlane.f32.xlu0 %v789_v19 }
 0x1f4   : > { %799 = vadd.xlane.f32.xlu0 %v798_v24 }
 0x1f8   : > { %796 = vadd.xlane.f32.xlu0 %v795_v27  ;;  %v918_v27 = vadd.s32 4294967216, %v1519_v42 }
 0x1fc   : > { %802 = vadd.xlane.f32.xlu0 %v801_v29 }
 0x200   : > { %805 = vadd.xlane.f32.xlu0 %v804_v31 }
 0x214   : > { %793 = vadd.xlane.f32.xlu1 %v792_v12  ;;  %v925_v12 = vadd.s32 4294967208, %v1519_v42 }
 0x260   : > { %v764_v32 = vpop.xlane.xlu0 %763 }
 0x264   : > { %v761_v33 = vpop.xlane.xlu0 %760  ;;  %v770_v34 = vpop.xlane.xlu1 %769 }
 0x268   : > { %v767_v36 = vpop.xlane.xlu1 %766 }
 0x269   : > { %v773_v35 = vpop.xlane.xlu0 %772 }
 0x26c   : > { %v776_v39 = vpop.xlane.xlu1 %775 }
 0x26d   : > { %v782_v37 = vpop.xlane.xlu0 %781 }
 0x270   : > { %v811_v43 = vpop.permute.xlu1 %810 }
 0x271   : > { %v779_v40 = vpop.xlane.xlu0 %778  ;;  %v1521_v45 = vrot.slane %v811_v43, %v815_v17  ;;  %v928_v17 = vsub.s32 %v925_v12, %v1516_v41 }
 0x273   : > { %v817_v49 = vadd.f32 %v1521_v45, %v761_v33  ;;  %v818_v50 = vadd.f32 %v1521_v45, %v764_v32  ;;  %v819_v53 = vadd.f32 %v1521_v45, %v767_v36  ;;  %v820_v61 = vadd.f32 %v1521_v45, %v770_v34 }
 0x274   : > { %v821_v1 = vadd.f32 %v1521_v45, %v773_v35  ;;  %v822_v7 = vadd.f32 %v1521_v45, %v776_v39  ;;  %v823_v15 = vadd.f32 %v1521_v45, %v779_v40  ;;  %v824_v22 = vadd.f32 %v1521_v45, %v782_v37 }
 0x275   : > { %v788_v44 = vpop.xlane.xlu0 %787  ;;  %v854_v55 = vrot.slane %v817_v49, %v853_v51  ;;  %v859_v56 = vrot.slane %v818_v50, %v858_v52  ;;  %v866_v59 = vrot.slane %v819_v53, %v865_v54  ;;  %v873_v5 = vrot.slane %v820_v61, %v872_v63 }
 0x276   : > { %v880_v10 = vrot.slane %v821_v1, %v879_v3  ;;  %v887_v19 = vrot.slane %v822_v7, %v886_v9  ;;  %v894_v24 = vrot.slane %v823_v15, %v893_v11  ;;  %v901_v31 = vrot.slane %v824_v22, %v900_v23 }
 0x277   : > { %v861_v62 = vsel %vm860_vm2, %v859_v56, %v854_v55  ;;  %v921_v33 = vsub.s32 %v918_v27, %v1516_v41  ;;  %v932_v35 = vadd.s32 4294967200, %v1519_v42  ;;  %v826_v36 = vadd.f32 %v1521_v45, %v788_v44 }
 0x278   : > { %v868_v2 = vsel %vm867_vm3, %v866_v59, %v861_v62  ;;  %v946_v39 = vadd.s32 4294967184, %v1519_v42  ;;  %v953_v40 = vadd.s32 4294967176, %v1519_v42  ;;  %v942_v51 = vsub.s32 %v939_v38, %v1516_v41 }
 0x279   : > { %v785_v48 = vpop.xlane.xlu0 %784  ;;  %v875_v8 = vsel %vm874_vm4, %v873_v5, %v868_v2  ;;  %v935_v47 = vsub.s32 %v932_v35, %v1516_v41  ;;  %v915_v50 = vrot.slane %v826_v36, %v914_v30 }
 0x27a   : > { %v882_v14 = vsel %vm881_vm5, %v880_v10, %v875_v8  ;;  %v825_v26 = vadd.f32 %v1521_v45, %v785_v48  ;;  %v949_v53 = vsub.s32 %v946_v39, %v1516_v41  ;;  %v956_v55 = vsub.s32 %v953_v40, %v1516_v41 }
 0x27b   : > { %v889_v21 = vsel %vm888_vm6, %v887_v19, %v882_v14 }
 0x27c   : > { %v896_v28 = vsel %vm895_vm7, %v894_v24, %v889_v21  ;;  %v908_v32 = vrot.slane %v825_v26, %v907_v25 }
 0x27d   : > { %v791_v58 = vpop.xlane.xlu0 %790  ;;  %v903_v37 = vsel %vm902_vm8, %v901_v31, %v896_v28 }
 0x27e   : > { %v827_v34 = vadd.f32 %v1521_v45, %v791_v58  ;;  %v910_v43 = vsel %vm909_vm9, %v908_v32, %v903_v37 }
 0x27f   : > { %v917_v56 = vsel %vm916_vm10, %v915_v50, %v910_v43 }
 0x280   : > { %v922_v46 = vrot.slane %v827_v34, %v921_v33 }
 0x281   : > { %v800_v4 = vpop.xlane.xlu0 %799 }
 0x282   : > { %v830_v52 = vadd.f32 %v1521_v45, %v800_v4  ;;  %v924_v59 = vsel %vm923_vm11, %v922_v46, %v917_v56 }
 0x284   : > { %v943_v61 = vrot.slane %v830_v52, %v942_v51 }
 0x285   : > { %v797_v18 = vpop.xlane.xlu0 %796 }
 0x286   : > { %v829_v48 = vadd.f32 %v1521_v45, %v797_v18 }
 0x288   : > { %v936_v60 = vrot.slane %v829_v48, %v935_v47 }
 0x289   : > { %v803_v29 = vpop.xlane.xlu0 %802 }
 0x28a   : > { %v831_v54 = vadd.f32 %v1521_v45, %v803_v29 }
 0x28c   : > { %v950_v41 = vrot.slane %v831_v54, %v949_v53 }
 0x28d   : > { %v806_v44 = vpop.xlane.xlu0 %805 }
 0x28e   : > { %v832_v57 = vadd.f32 %v1521_v45, %v806_v44 }
 0x290   : > { %v957_v0 = vrot.slane %v832_v57, %v956_v55 }
 0x2a1   : > { %v794_v49 = vpop.xlane.xlu1 %793 }
 0x2a2   : > { %v828_v42 = vadd.f32 %v1521_v45, %v794_v49 }
 0x2a4   : > { %v929_v58 = vrot.slane %v828_v42, %v928_v17 }
 0x2a6   : > { %v931_v62 = vsel %vm930_vm12, %v929_v58, %v924_v59 }
 0x2a7   : > { %v938_v63 = vsel %vm937_vm13, %v936_v60, %v931_v62 }
 0x2a8   : > { %v945_v45 = vsel %vm944_vm14, %v943_v61, %v938_v63 }
 0x2a9   : > { %v952_v1 = vsel %vm951_vm15, %v950_v41, %v945_v45 }
 0x2aa   : > { %v959_v2 = vsel %vm958_vm0, %v957_v0, %v952_v1 }
 0x2ab   : > { %961 = vst [vmem:[%s273_s24] sm:$0x1] %v959_v2 }
 0x2ac   : > { %1239 = shalt.err (!%p1236_p3)
}
 0x2ad   : > { %s1240_s18 = scalar_lea.hbm %s1580_s9, 16  ;;  %s1244_s21 = scalar_lea.hbm %s1631_s7, 32 }
 0x2ae   : > { %p1241_p4 = scmp.ne.s32.totalorder %s1580_s9, %s1240_s18  ;;  %p1245_p9 = scmp.lt.u32.totalorder %s1580_s9, %s1631_s7 }
 0x2af   : > { %p1246_p10 = scmp.lt.u32.totalorder %s1244_s21, %s1240_s18  ;;  %p1248_p12 = scmp.lt.u32.totalorder %s1240_s18, %s1580_s9 }
 0x2b0   : > { %p1242_p7 = pnand %p1241_p4, %p1370_p5 }
 0x2b1   : > { %p1247_p11 = por %p1246_p10, %p1245_p9 }
 0x2b2   : > { %p1243_p8 = pneg %p1242_p7 }
 0x2b3   : > { %p1249_p13 = por %p1248_p12, %p1247_p11 }
 0x2b5   : > { %p1250_p0 = pnand %p1249_p13, %p1243_p8 }
 0x2b7   : > { %1253 = shalt.err (!%p1250_p0)
}
 0x2b8   : > { %1184 = dma.vmem_to_hbm [thread:$0]  (%p1370_p5), %s1582_s25, 16, %s1580_s9, %s963_s10  }
 0x2b9 PF: > { %p1190_p1 = scmp.ge.s32.totalorder %s1288_s29, 2  ;;  %s987_s24 = sand.u32 1, %s1276_s26  }
 0x2ba   : > { %s988_s6 = scalar_lea.sflag [#allocation4], %s987_s24 }
 0x2bb   : > { %p1187_p2 = pnand %p1190_p1, %p1374_p6 }
 0x2bd   : > { %1271 = dma.done.wait (!%p1187_p2), %s988_s6, 16  }
 0x2be   : > { %1273 = vsyncadd (!%p1187_p2), %s988_s6, 4294967280  ;;  %p19_p3 = scmp.ge.s32.totalorder %s1358_s8, 4   ;;  %s1634_s26 = smov %s1280_s27 }
 0x2bf   : > { %s1635_s27 = smov %s1284_s28  ;;  %s1636_s28 = smov %s1368_s11 }
 0x2c0   : > { %s1637_s29 = smov %s1358_s8  ;;  %21 = sbr.rel (!%p19_p3) target bundleno = 6 (0x6), region = 83 }
 0x2c7   :  { %992 = vsyncpa [#allocation4], 1 }
 0x2c8   :  { %994 = vsyncpa [#allocation4 + $0x1], 1 }

</bundles_post_ra>
